<compile_context>
chip_gen: v5e
topology: v5e:2x2
jax: 0.10.0
libtpu: 0.0.40
codegen_flags: <defaults>
</compile_context>

<pallas_src>
import jax
import jax.numpy as jnp
import numpy as np
from jax.experimental import pallas as pl
from jax.experimental.pallas import tpu as pltpu


# ----------------------------------------------------------------------------
# Generation-aware tiling helpers
# ----------------------------------------------------------------------------
def _tpu_vmem_bytes():
    """Physical VMEM capacity; conservative 64 MiB if the query fails."""
    try:
        return int(pltpu.get_tpu_info().vmem_capacity_bytes)
    except Exception:
        return 64 * 1024 * 1024


def _choose_tiling(b_padded, plane_work_bytes):
    """Pick (planes-per-block, vmem_limit) for the flattened-plane layout.

    b_padded:          number of (H*W) planes, already padded to a multiple of 8.
    plane_work_bytes:  bytes of ONE plane in f32 working precision.
    Returns (bt, vmem_limit); bt is None when a plane is too large for this
    layout (caller falls back to plain XLA — see TODO at top of file).
    """
    vmem = _tpu_vmem_bytes()
    big_vmem = vmem >= 96 * 1024 * 1024          # v5e / v6e class (128 MiB)
    budget = (2 if big_vmem else 1) * 1024 * 1024      # per-input block budget
    vmem_limit = (64 if big_vmem else 32) * 1024 * 1024

    # Blocks must hold >= 8 planes (full sublane rows).  Live f32 temporaries
    # are ~12-14x one block, so keep 8 planes within the budget.
    if 8 * plane_work_bytes > budget:
        return None, vmem_limit

    cap = budget // plane_work_bytes             # >= 8 here
    cands = [d for d in range(8, b_padded + 1, 8)
             if b_padded % d == 0 and d <= cap]
    # Prefer a grid with >= 2 steps (keeps both v7x TensorCores busy; one
    # extra ~0.35us step is noise on 1-TC chips), then the largest block.
    bt = max(cands, key=lambda d: ((b_padded // d) >= 2, d))
    return bt, vmem_limit


def _border_masks(H, W):
    """(4, H*W) int32: [row==0, row==H-1, col==0, col==W-1] per flattened lane."""
    lane = np.arange(H * W)
    row, col = lane // W, lane % W
    m = np.stack([row == 0, row == H - 1, col == 0, col == W - 1])
    return jnp.asarray(m.astype(np.int32))


# ----------------------------------------------------------------------------
# Kernel
# ----------------------------------------------------------------------------
def _make_ssim_kernel(H, W, c1, c2):
    L = H * W
    # Fold the five 1/9 box-filter scalings into the ratio: the common 1/81^2
    # cancels, so only the constants change (compile-time floats).
    C1 = 81.0 * c1
    C2 = 81.0 * c2

    def kernel(mask_ref, a_ref, b_ref, o_ref):
        a = a_ref[...].astype(jnp.float32)       # (Bt, H*W), lane-dense
        b = b_ref[...].astype(jnp.float32)

        m = mask_ref[...]                        # (4, L) int32, resident block
        row_first = m[0:1, :] != 0               # image row i == 0
        row_last = m[1:2, :] != 0                # image row i == H-1
        col_first = m[2:3, :] != 0               # image col j == 0
        col_last = m[3:4, :] != 0                # image col j == W-1

        def rolls(x, s):
            # down[c] = x[c - s]  (neighbour above / left)
            # up[c]   = x[c + s]  (neighbour below / right)
            # Non-negative shifts only; roll by -s == roll by L - s.
            down = pltpu.roll(x, s, axis=1)
            up = pltpu.roll(x, (L - s) % L, axis=1)
            return down, up

        # ---- Row pass (stride W): reflected neighbours of a and b are shared
        # across the five quantities (rolls commute with elementwise products).
        da, ua = rolls(a, W)
        db, ub = rolls(b, W)
        pa = jnp.where(row_first, ua, da)        # a[i-1, j] with reflection
        na = jnp.where(row_last, da, ua)         # a[i+1, j]
        pb = jnp.where(row_first, ub, db)
        nb = jnp.where(row_last, db, ub)

        ra = a + pa + na                         # 3-row sums
        rb = b + pb + nb
        raa = a * a + pa * pa + na * na
        rbb = b * b + pb * pb + nb * nb
        rab = a * b + pa * pb + na * nb

        # ---- Column pass (stride 1): per-quantity reflection.
        def colsum(x):
            d, u = rolls(x, 1)
            prev = jnp.where(col_first, u, d)
            nxt = jnp.where(col_last, d, u)
            return x + prev + nxt

        S_a = colsum(ra)                         # raw 3x3 sums (no 1/9)
        S_b = colsum(rb)
        S_aa = colsum(raa)
        S_bb = colsum(rbb)
        S_ab = colsum(rab)

        Sa2 = S_a * S_a
        Sb2 = S_b * S_b
        sq = Sa2 + Sb2
        t = 2.0 * (S_a * S_b)

        num = (t + C1) * (18.0 * S_ab - t + C2)
        den = (sq + C1) * (9.0 * (S_aa + S_bb) - sq + C2)

        # EUP approximate reciprocal + one Newton step -> f32 accuracy.
        r = pl.reciprocal(den, approx=True)
        r = r * (2.0 - den * r)
        val = (1.0 - num * r) * 0.5
        o_ref[...] = jnp.clip(val, 0.0, 1.0).astype(o_ref.dtype)

    return kernel


# ----------------------------------------------------------------------------
# Wrapper
# ----------------------------------------------------------------------------
def ssim_pallas(im1, im2, c1=0.01 ** 2, c2=0.03 ** 2):
    """Computes ((1 - SSIM)/2).clamp(0,1) exactly like the PyTorch module.

    im1, im2: (N, C, H, W) float arrays.  Returns (N, C, H, W).
    """
    assert im1.shape == im2.shape and im1.ndim == 4
    N, C, H, W = im1.shape
    assert H >= 2 and W >= 2, "ReflectionPad2d(1) needs H, W >= 2"
    B, L = N * C, H * W

    bt, vmem_limit = _choose_tiling(((B + 7) // 8) * 8, L * 4)
    if bt is None:
        # TODO(synk): H-tiled kernel with a 2-row halo for >~0.25 MP planes;
        # for now keep correctness via the XLA path.
        return ssim_reference(im1, im2, c1, c2)

    # Row-major flatten: contiguous, no transpose, no extra HBM traffic.
    x1 = im1.reshape(B, L)
    x2 = im2.reshape(B, L)

    # Pad the plane count to a multiple of 8: full sublane rows, unmasked
    # stores.  Zero planes are harmless (den >= c1*c2 > 0) and sliced off.
    B_pad = ((B + 7) // 8) * 8
    if B_pad != B:
        x1 = jnp.pad(x1, ((0, B_pad - B), (0, 0)))
        x2 = jnp.pad(x2, ((0, B_pad - B), (0, 0)))

    masks = _border_masks(H, W)                  # (4, L) int32, stays resident
    grid = (B_pad // bt,)
    kernel = _make_ssim_kernel(H, W, float(c1), float(c2))

    out = pl.pallas_call(
        kernel,
        out_shape=jax.ShapeDtypeStruct((B_pad, L), im1.dtype),
        grid=grid,
        in_specs=[
            pl.BlockSpec((4, L), lambda i: (0, 0)),    # boundary masks (resident)
            pl.BlockSpec((bt, L), lambda i: (i, 0)),
            pl.BlockSpec((bt, L), lambda i: (i, 0)),
        ],
        out_specs=pl.BlockSpec((bt, L), lambda i: (i, 0)),
        compiler_params=pltpu.CompilerParams(
            dimension_semantics=("parallel",),
            vmem_limit_bytes=vmem_limit,
        ),
    )(masks, x1, x2)

    return out[:B].reshape(N, C, H, W)


# ----------------------------------------------------------------------------
# Pure-JAX reference (mirrors the PyTorch forward)
# ----------------------------------------------------------------------------
def ssim_reference(im1, im2, c1=0.01 ** 2, c2=0.03 ** 2):
    N, C, H, W = im1.shape
    p1 = jnp.pad(im1, ((0, 0), (0, 0), (1, 1), (1, 1)), mode="reflect")
    p2 = jnp.pad(im2, ((0, 0), (0, 0), (1, 1), (1, 1)), mode="reflect")

    def avg3(x):
        acc = jnp.zeros((N, C, H, W), x.dtype)
        for di in range(3):
            for dj in range(3):
                acc = acc + x[:, :, di:di + H, dj:dj + W]
        return acc / 9.0

    m1 = avg3(p1)
    m2 = avg3(p2)
    s1 = avg3(p1 * p1) - m1 * m1
    s2 = avg3(p2 * p2) - m2 * m2
    s12 = avg3(p1 * p2) - m1 * m2
    num = (2 * m1 * m2 + c1) * (2 * s12 + c2)
    den = (m1 ** 2 + m2 ** 2 + c1) * (s1 + s2 + c2)
    return jnp.clip((1 - num / den) / 2.0, 0.0, 1.0)


if __name__ == "__main__":
    key = jax.random.PRNGKey(0)
    k1, k2 = jax.random.split(key)
    N, C, H, W = 2, 4, 16, 16
    im1 = jax.random.uniform(k1, (N, C, H, W), dtype=jnp.float32)
    im2 = jax.random.uniform(k2, (N, C, H, W), dtype=jnp.float32)

    out = ssim_pallas(im1, im2)
    out = jax.block_until_ready(out)

    ref = ssim_reference(im1, im2)
    assert out.shape == (N, C, H, W)
    assert jnp.allclose(out, ref, atol=1e-5, rtol=1e-5), "mismatch vs reference"

    print("KERNEL_OK")
</pallas_src>

<mosaic_0001>
module attributes {stable_mosaic.version = 11 : i64} {
  func.func @kernel(%arg0: i32, %arg1: memref<4x256xi32, #tpu.memory_space<vmem>>, %arg2: memref<8x256xf32, #tpu.memory_space<vmem>>, %arg3: memref<8x256xf32, #tpu.memory_space<vmem>>, %arg4: memref<8x256xf32, #tpu.memory_space<vmem>>) attributes {dimension_semantics = [#tpu.dimension_semantics<parallel>], iteration_bounds = array<i64: 1>, scalar_prefetch = 0 : i64, scratch_operands = 0 : i64, tpu.core_type = #tpu.core_type<tc>, window_params = [{pipeline_mode = #tpu.pipeline_mode<synchronous>, transform_indices = @transform_0, window_bounds = array<i64: 4, 256>}, {transform_indices = @transform_1, window_bounds = array<i64: 8, 256>}, {transform_indices = @transform_2, window_bounds = array<i64: 8, 256>}, {transform_indices = @transform_3, window_bounds = array<i64: 8, 256>}]} {
    %c0 = arith.constant 0 : index
    %c0_0 = arith.constant 0 : index
    %0 = vector.load %arg2[%c0, %c0_0] : memref<8x256xf32, #tpu.memory_space<vmem>>, vector<8x256xf32>
    %c0_1 = arith.constant 0 : index
    %c0_2 = arith.constant 0 : index
    %1 = vector.load %arg3[%c0_1, %c0_2] : memref<8x256xf32, #tpu.memory_space<vmem>>, vector<8x256xf32>
    %c0_3 = arith.constant 0 : index
    %c0_4 = arith.constant 0 : index
    %2 = vector.load %arg1[%c0_3, %c0_4] : memref<4x256xi32, #tpu.memory_space<vmem>>, vector<4x256xi32>
    %3 = vector.extract_strided_slice %2 {offsets = [0, 0], sizes = [1, 256], strides = [1, 1]} : vector<4x256xi32> to vector<1x256xi32>
    %c0_i32 = arith.constant 0 : i32
    %4 = vector.broadcast %c0_i32 : i32 to vector<1x256xi32>
    %5 = arith.cmpi ne, %3, %4 : vector<1x256xi32>
    %6 = vector.extract_strided_slice %2 {offsets = [1, 0], sizes = [1, 256], strides = [1, 1]} : vector<4x256xi32> to vector<1x256xi32>
    %c0_i32_5 = arith.constant 0 : i32
    %7 = vector.broadcast %c0_i32_5 : i32 to vector<1x256xi32>
    %8 = arith.cmpi ne, %6, %7 : vector<1x256xi32>
    %9 = vector.extract_strided_slice %2 {offsets = [2, 0], sizes = [1, 256], strides = [1, 1]} : vector<4x256xi32> to vector<1x256xi32>
    %c0_i32_6 = arith.constant 0 : i32
    %10 = vector.broadcast %c0_i32_6 : i32 to vector<1x256xi32>
    %11 = arith.cmpi ne, %9, %10 : vector<1x256xi32>
    %12 = vector.extract_strided_slice %2 {offsets = [3, 0], sizes = [1, 256], strides = [1, 1]} : vector<4x256xi32> to vector<1x256xi32>
    %c0_i32_7 = arith.constant 0 : i32
    %13 = vector.broadcast %c0_i32_7 : i32 to vector<1x256xi32>
    %14 = arith.cmpi ne, %12, %13 : vector<1x256xi32>
    %c16_i32 = arith.constant 16 : i32
    %15 = tpu.dynamic_rotate %0 by %c16_i32 dim 1 : vector<8x256xf32>, i32 -> vector<8x256xf32>
    %c240_i32 = arith.constant 240 : i32
    %16 = tpu.dynamic_rotate %0 by %c240_i32 dim 1 : vector<8x256xf32>, i32 -> vector<8x256xf32>
    %c16_i32_8 = arith.constant 16 : i32
    %17 = tpu.dynamic_rotate %1 by %c16_i32_8 dim 1 : vector<8x256xf32>, i32 -> vector<8x256xf32>
    %c240_i32_9 = arith.constant 240 : i32
    %18 = tpu.dynamic_rotate %1 by %c240_i32_9 dim 1 : vector<8x256xf32>, i32 -> vector<8x256xf32>
    %19 = vector.shape_cast %5 : vector<1x256xi1> to vector<1x256xi1>
    %20 = vector.broadcast %19 : vector<1x256xi1> to vector<8x256xi1>
    %21 = arith.select %20, %16, %15 : vector<8x256xi1>, vector<8x256xf32>
    %22 = vector.shape_cast %8 : vector<1x256xi1> to vector<1x256xi1>
    %23 = vector.broadcast %22 : vector<1x256xi1> to vector<8x256xi1>
    %24 = arith.select %23, %15, %16 : vector<8x256xi1>, vector<8x256xf32>
    %25 = vector.shape_cast %5 : vector<1x256xi1> to vector<1x256xi1>
    %26 = vector.broadcast %25 : vector<1x256xi1> to vector<8x256xi1>
    %27 = arith.select %26, %18, %17 : vector<8x256xi1>, vector<8x256xf32>
    %28 = vector.shape_cast %8 : vector<1x256xi1> to vector<1x256xi1>
    %29 = vector.broadcast %28 : vector<1x256xi1> to vector<8x256xi1>
    %30 = arith.select %29, %17, %18 : vector<8x256xi1>, vector<8x256xf32>
    %31 = arith.addf %0, %21 : vector<8x256xf32>
    %32 = arith.addf %31, %24 : vector<8x256xf32>
    %33 = arith.addf %1, %27 : vector<8x256xf32>
    %34 = arith.addf %33, %30 : vector<8x256xf32>
    %35 = arith.mulf %0, %0 : vector<8x256xf32>
    %36 = arith.mulf %21, %21 : vector<8x256xf32>
    %37 = arith.addf %35, %36 : vector<8x256xf32>
    %38 = arith.mulf %24, %24 : vector<8x256xf32>
    %39 = arith.addf %37, %38 : vector<8x256xf32>
    %40 = arith.mulf %1, %1 : vector<8x256xf32>
    %41 = arith.mulf %27, %27 : vector<8x256xf32>
    %42 = arith.addf %40, %41 : vector<8x256xf32>
    %43 = arith.mulf %30, %30 : vector<8x256xf32>
    %44 = arith.addf %42, %43 : vector<8x256xf32>
    %45 = arith.mulf %0, %1 : vector<8x256xf32>
    %46 = arith.mulf %21, %27 : vector<8x256xf32>
    %47 = arith.addf %45, %46 : vector<8x256xf32>
    %48 = arith.mulf %24, %30 : vector<8x256xf32>
    %49 = arith.addf %47, %48 : vector<8x256xf32>
    %c1_i32 = arith.constant 1 : i32
    %50 = tpu.dynamic_rotate %32 by %c1_i32 dim 1 : vector<8x256xf32>, i32 -> vector<8x256xf32>
    %c255_i32 = arith.constant 255 : i32
    %51 = tpu.dynamic_rotate %32 by %c255_i32 dim 1 : vector<8x256xf32>, i32 -> vector<8x256xf32>
    %52 = vector.shape_cast %11 : vector<1x256xi1> to vector<1x256xi1>
    %53 = vector.broadcast %52 : vector<1x256xi1> to vector<8x256xi1>
    %54 = arith.select %53, %51, %50 : vector<8x256xi1>, vector<8x256xf32>
    %55 = vector.shape_cast %14 : vector<1x256xi1> to vector<1x256xi1>
    %56 = vector.broadcast %55 : vector<1x256xi1> to vector<8x256xi1>
    %57 = arith.select %56, %50, %51 : vector<8x256xi1>, vector<8x256xf32>
    %58 = arith.addf %32, %54 : vector<8x256xf32>
    %59 = arith.addf %58, %57 : vector<8x256xf32>
    %c1_i32_10 = arith.constant 1 : i32
    %60 = tpu.dynamic_rotate %34 by %c1_i32_10 dim 1 : vector<8x256xf32>, i32 -> vector<8x256xf32>
    %c255_i32_11 = arith.constant 255 : i32
    %61 = tpu.dynamic_rotate %34 by %c255_i32_11 dim 1 : vector<8x256xf32>, i32 -> vector<8x256xf32>
    %62 = vector.shape_cast %11 : vector<1x256xi1> to vector<1x256xi1>
    %63 = vector.broadcast %62 : vector<1x256xi1> to vector<8x256xi1>
    %64 = arith.select %63, %61, %60 : vector<8x256xi1>, vector<8x256xf32>
    %65 = vector.shape_cast %14 : vector<1x256xi1> to vector<1x256xi1>
    %66 = vector.broadcast %65 : vector<1x256xi1> to vector<8x256xi1>
    %67 = arith.select %66, %60, %61 : vector<8x256xi1>, vector<8x256xf32>
    %68 = arith.addf %34, %64 : vector<8x256xf32>
    %69 = arith.addf %68, %67 : vector<8x256xf32>
    %c1_i32_12 = arith.constant 1 : i32
    %70 = tpu.dynamic_rotate %39 by %c1_i32_12 dim 1 : vector<8x256xf32>, i32 -> vector<8x256xf32>
    %c255_i32_13 = arith.constant 255 : i32
    %71 = tpu.dynamic_rotate %39 by %c255_i32_13 dim 1 : vector<8x256xf32>, i32 -> vector<8x256xf32>
    %72 = vector.shape_cast %11 : vector<1x256xi1> to vector<1x256xi1>
    %73 = vector.broadcast %72 : vector<1x256xi1> to vector<8x256xi1>
    %74 = arith.select %73, %71, %70 : vector<8x256xi1>, vector<8x256xf32>
    %75 = vector.shape_cast %14 : vector<1x256xi1> to vector<1x256xi1>
    %76 = vector.broadcast %75 : vector<1x256xi1> to vector<8x256xi1>
    %77 = arith.select %76, %70, %71 : vector<8x256xi1>, vector<8x256xf32>
    %78 = arith.addf %39, %74 : vector<8x256xf32>
    %79 = arith.addf %78, %77 : vector<8x256xf32>
    %c1_i32_14 = arith.constant 1 : i32
    %80 = tpu.dynamic_rotate %44 by %c1_i32_14 dim 1 : vector<8x256xf32>, i32 -> vector<8x256xf32>
    %c255_i32_15 = arith.constant 255 : i32
    %81 = tpu.dynamic_rotate %44 by %c255_i32_15 dim 1 : vector<8x256xf32>, i32 -> vector<8x256xf32>
    %82 = vector.shape_cast %11 : vector<1x256xi1> to vector<1x256xi1>
    %83 = vector.broadcast %82 : vector<1x256xi1> to vector<8x256xi1>
    %84 = arith.select %83, %81, %80 : vector<8x256xi1>, vector<8x256xf32>
    %85 = vector.shape_cast %14 : vector<1x256xi1> to vector<1x256xi1>
    %86 = vector.broadcast %85 : vector<1x256xi1> to vector<8x256xi1>
    %87 = arith.select %86, %80, %81 : vector<8x256xi1>, vector<8x256xf32>
    %88 = arith.addf %44, %84 : vector<8x256xf32>
    %89 = arith.addf %88, %87 : vector<8x256xf32>
    %c1_i32_16 = arith.constant 1 : i32
    %90 = tpu.dynamic_rotate %49 by %c1_i32_16 dim 1 : vector<8x256xf32>, i32 -> vector<8x256xf32>
    %c255_i32_17 = arith.constant 255 : i32
    %91 = tpu.dynamic_rotate %49 by %c255_i32_17 dim 1 : vector<8x256xf32>, i32 -> vector<8x256xf32>
    %92 = vector.shape_cast %11 : vector<1x256xi1> to vector<1x256xi1>
    %93 = vector.broadcast %92 : vector<1x256xi1> to vector<8x256xi1>
    %94 = arith.select %93, %91, %90 : vector<8x256xi1>, vector<8x256xf32>
    %95 = vector.shape_cast %14 : vector<1x256xi1> to vector<1x256xi1>
    %96 = vector.broadcast %95 : vector<1x256xi1> to vector<8x256xi1>
    %97 = arith.select %96, %90, %91 : vector<8x256xi1>, vector<8x256xf32>
    %98 = arith.addf %49, %94 : vector<8x256xf32>
    %99 = arith.addf %98, %97 : vector<8x256xf32>
    %100 = arith.mulf %59, %59 : vector<8x256xf32>
    %101 = arith.mulf %69, %69 : vector<8x256xf32>
    %102 = arith.addf %100, %101 : vector<8x256xf32>
    %103 = arith.mulf %59, %69 : vector<8x256xf32>
    %cst = arith.constant 2.000000e+00 : f32
    %104 = vector.broadcast %cst : f32 to vector<8x256xf32>
    %105 = arith.mulf %104, %103 : vector<8x256xf32>
    %cst_18 = arith.constant 8.100000e-03 : f32
    %106 = vector.broadcast %cst_18 : f32 to vector<8x256xf32>
    %107 = arith.addf %105, %106 : vector<8x256xf32>
    %cst_19 = arith.constant 1.800000e+01 : f32
    %108 = vector.broadcast %cst_19 : f32 to vector<8x256xf32>
    %109 = arith.mulf %108, %99 : vector<8x256xf32>
    %110 = arith.subf %109, %105 : vector<8x256xf32>
    %cst_20 = arith.constant 7.290000e-02 : f32
    %111 = vector.broadcast %cst_20 : f32 to vector<8x256xf32>
    %112 = arith.addf %110, %111 : vector<8x256xf32>
    %113 = arith.mulf %107, %112 : vector<8x256xf32>
    %cst_21 = arith.constant 8.100000e-03 : f32
    %114 = vector.broadcast %cst_21 : f32 to vector<8x256xf32>
    %115 = arith.addf %102, %114 : vector<8x256xf32>
    %116 = arith.addf %79, %89 : vector<8x256xf32>
    %cst_22 = arith.constant 9.000000e+00 : f32
    %117 = vector.broadcast %cst_22 : f32 to vector<8x256xf32>
    %118 = arith.mulf %117, %116 : vector<8x256xf32>
    %119 = arith.subf %118, %102 : vector<8x256xf32>
    %cst_23 = arith.constant 7.290000e-02 : f32
    %120 = vector.broadcast %cst_23 : f32 to vector<8x256xf32>
    %121 = arith.addf %119, %120 : vector<8x256xf32>
    %122 = arith.mulf %115, %121 : vector<8x256xf32>
    %123 = tpu.reciprocal %122 {approx = true} : vector<8x256xf32> -> vector<8x256xf32>
    %124 = arith.mulf %122, %123 : vector<8x256xf32>
    %cst_24 = arith.constant 2.000000e+00 : f32
    %125 = vector.broadcast %cst_24 : f32 to vector<8x256xf32>
    %126 = arith.subf %125, %124 : vector<8x256xf32>
    %127 = arith.mulf %123, %126 : vector<8x256xf32>
    %128 = arith.mulf %113, %127 : vector<8x256xf32>
    %cst_25 = arith.constant 1.000000e+00 : f32
    %129 = vector.broadcast %cst_25 : f32 to vector<8x256xf32>
    %130 = arith.subf %129, %128 : vector<8x256xf32>
    %cst_26 = arith.constant 5.000000e-01 : f32
    %131 = vector.broadcast %cst_26 : f32 to vector<8x256xf32>
    %132 = arith.mulf %130, %131 : vector<8x256xf32>
    %cst_27 = arith.constant 0.000000e+00 : f32
    %cst_28 = arith.constant 1.000000e+00 : f32
    %133 = vector.broadcast %cst_27 : f32 to vector<8x256xf32>
    %134 = arith.maximumf %133, %132 : vector<8x256xf32>
    %135 = vector.broadcast %cst_28 : f32 to vector<8x256xf32>
    %136 = arith.minimumf %135, %134 : vector<8x256xf32>
    %c0_29 = arith.constant 0 : index
    %c0_30 = arith.constant 0 : index
    %137 = vector.load %arg4[%c0_29, %c0_30] : memref<8x256xf32, #tpu.memory_space<vmem>>, vector<8x256xf32>
    tpu.vector_store %arg4[%c0_29, %c0_30], %136 {strides = array<i32>} : memref<8x256xf32, #tpu.memory_space<vmem>>, vector<8x256xf32>,
    return
  }
  func.func @transform_0(%arg0: i32) -> (i32, i32) {
    %c0_i32 = arith.constant 0 : i32
    %c0_i32_0 = arith.constant 0 : i32
    %c0_i32_1 = arith.constant 0 : i32
    return %c0_i32, %c0_i32_0 : i32, i32
  }
  func.func @transform_1(%arg0: i32) -> (i32, i32) {
    %c0_i32 = arith.constant 0 : i32
    %c0_i32_0 = arith.constant 0 : i32
    return %arg0, %c0_i32 : i32, i32
  }
  func.func @transform_2(%arg0: i32) -> (i32, i32) {
    %c0_i32 = arith.constant 0 : i32
    %c0_i32_0 = arith.constant 0 : i32
    return %arg0, %c0_i32 : i32, i32
  }
  func.func @transform_3(%arg0: i32) -> (i32, i32) {
    %c0_i32 = arith.constant 0 : i32
    %c0_i32_0 = arith.constant 0 : i32
    return %arg0, %c0_i32 : i32, i32
  }
}

</mosaic_0001>

<bundles_post_ra>
// kernel: tpu_custom_call.1
= control target key start
LH: loop header
LB: loop body
LE: loop exit
PB: predicated region body
PF: predicated region fallthrough
CT: control target
= control target key end

     0   :  { %8 = vsyncpa [#allocation3], 0  ;;  %s723_s0 = inlined_call_operand.hbm [shape: s32[4,256], index: 0, kind: input, shape index: {}]   ;;  %s724_s1 = inlined_call_operand.hbm [shape: f32[8,256], index: 1, kind: input, shape index: {}]   ;;  %s725_s2 = inlined_call_operand.hbm [shape: f32[8,256], index: 2, kind: input, shape index: {}]   ;;  %s726_s3 = inlined_call_operand.hbm [shape: f32[8,256], index: 3, kind: output, shape index: {}]  }
   0x1   :  { %9 = vsyncpa [#allocation6], 0  ;;  %s27_s14 = sshll.u32 %s724_s1, 4  ;;  %s28_s14 = int_to_ptr.hbm [resolvable:$true] %s27_s14 }
   0x2   :  { %10 = vsyncpa [#allocation4], 0  ;;  %s448_s15 = smov [#allocation5]   ;;  %s16_s19 = sshll.u32 %s723_s0, 4  ;;  %s17_s19 = int_to_ptr.hbm [resolvable:$true] %s16_s19 }
   0x3   :  { %s29_s16 = sshll.u32 %s448_s15, 4  ;;  %s449_s20 = smov [#allocation2]   ;;  %s30_s16 = int_to_ptr.vmem [resolvable:$true] %s29_s16 }
   0x4   :  { %32 = dma.hbm_to_vmem [thread:$0]  %s28_s14, 256, %s30_s16, [#allocation6]  }
   0x5   :  { %s18_s21 = sshll.u32 %s449_s20, 4  ;;  %s38_s24 = sshll.u32 %s725_s2, 4  ;;  %s19_s21 = int_to_ptr.vmem [resolvable:$true] %s18_s21  ;;  %s39_s24 = int_to_ptr.hbm [resolvable:$true] %s38_s24 }
   0x6   :  { %21 = dma.hbm_to_vmem [thread:$0]  %s17_s19, 128, %s19_s21, [#allocation3]  }
   0x7   :  { %s450_s1 = smov [#allocation7]  }
   0x8   :  { %s40_s25 = sshll.u32 %s450_s1, 4  ;;  %s41_s25 = int_to_ptr.vmem [resolvable:$true] %s40_s25 }
   0x9   :  { %43 = dma.hbm_to_vmem [thread:$0]  %s39_s24, 256, %s41_s25, [#allocation6]  }
   0xa   :  { %442 = dma.done.wait [#allocation3], 128  }
   0xb   :  { %443 = vsyncadd [#allocation3], 4294967168 }
   0xc   :  { %444 = dma.done.wait [#allocation6], 512  }
   0xd   :  { %445 = vsyncadd [#allocation6], 4294966784  ;;  %v486_v0 = vld [vmem:[#allocation5] sm:$0xff]  ;;  %s451_s0 = smov 112   ;;  %s452_s26 = smov 16   ;;  %v490_v1 = vld [vmem:[#allocation7] sm:$0xff]  ;;  %v66_v7 = vlaneseq }
   0xe   :  { %71 = vrot.lane.b32.xlu1 %v486_v0, %s451_s0  ;;  %62 = vrot.lane.b32.xlu0 %v486_v0, %s452_s26  ;;  %v493_v2 = vld [vmem:[#allocation5 + $0x8] sm:$0xff]  ;;  %v497_v3 = vld [vmem:[#allocation7 + $0x8] sm:$0xff]  ;;  %v453_v5 = vmov 0   ;;  %s454_s2 = smov 127   ;;  %s455_s27 = smov 1   ;;  %v119_v50 = vmul.f32 %v486_v0, %v486_v0  ;;  %v129_v60 = vmul.f32 %v490_v1, %v490_v1 }
   0xf   :  { %78 = vrot.lane.b32.xlu2 %v490_v1, %s452_s26  ;;  %v60_v4 = vld [vmem:[#allocation2] sm:$0xff]  ;;  %v508_v14 = vand.u32 127, %v66_v7  ;;  %v120_v54 = vmul.f32 %v493_v2, %v493_v2  ;;  %v130_v62 = vmul.f32 %v497_v3, %v497_v3  ;;  %s456_s28 = smov [#allocation8]   ;;  %s322_s5 = sshll.u32 %s726_s3, 4  ;;  %s323_s5 = int_to_ptr.hbm [resolvable:$true] %s322_s5 }
  0x10   :  { %vm61_vm0 = vcmp.ne.s32.totalorder %v60_v4, 0  ;;  %s320_s29 = sshll.u32 %s456_s28, 4  ;;  %s321_s29 = int_to_ptr.vmem [resolvable:$true] %s320_s29 }
  0x11   :  { %v502_v6 = vsel %vm61_vm0, 1, %v453_v5  ;;  %vm68_vm1 = vcmp.lt.s32.totalorder %v508_v14, 16  ;;  %vm75_vm2 = vcmp.lt.s32.totalorder %v508_v14, 112  ;;  %vm153_vm7 = vcmp.lt.s32.totalorder %v508_v14, 1 }
  0x12   :  { %v91_v8 = vperm.slane %v502_v6, 0  ;;  %v92_v9 = vperm.slane %v502_v6, 4  ;;  %v99_v12 = vperm.slane %v502_v6, 1  ;;  %v100_v13 = vperm.slane %v502_v6, 5 }
  0x13   :  { %vm160_vm8 = vcmp.lt.s32.totalorder %v508_v14, 127 }
  0x14   :  { %v93_v15 = vperm.slane %v91_v8, 0  ;;  %v94_v16 = vperm.slane %v92_v9, 0  ;;  %v101_v18 = vperm.slane %v99_v12, 1  ;;  %v102_v19 = vperm.slane %v100_v13, 1 }
  0x15   :  { %v139_v9 = vmul.f32 %v490_v1, %v486_v0  ;;  %v140_v13 = vmul.f32 %v497_v3, %v493_v2 }
  0x16   :  { %73 = vrot.lane.b32.xlu1 %v493_v2, %s451_s0  ;;  %64 = vrot.lane.b32.xlu0 %v493_v2, %s452_s26  ;;  %vm95_vm3 = vcmp.eq.s32.totalorder %v93_v15, 1  ;;  %vm96_vm4 = vcmp.eq.s32.totalorder %v94_v16, 1  ;;  %vm103_vm5 = vcmp.eq.s32.totalorder %v101_v18, 1  ;;  %vm104_vm6 = vcmp.eq.s32.totalorder %v102_v19, 1 }
  0x17   :  { %80 = vrot.lane.b32.xlu2 %v497_v3, %s452_s26 }
  0x1e   :  { %86 = vrot.lane.b32.xlu1 %v497_v3, %s451_s0  ;;  %84 = vrot.lane.b32.xlu0 %v490_v1, %s451_s0 }
  0x69   :  { %v79_v17 = vpop.permute.xlu2 %78 }
  0x71   :  { %v81_v34 = vpop.permute.xlu2 %80 }
  0x72   :  { %v82_v37 = vsel %vm68_vm1, %v79_v17, %v81_v34  ;;  %v83_v38 = vsel %vm68_vm1, %v81_v34, %v79_v17  ;;  %v172_v34 = vperm.slane %v502_v6, 7 }
  0x80   :  { %v72_v10 = vpop.permute.xlu1 %71  ;;  %v63_v11 = vpop.permute.xlu0 %62 }
  0x88   :  { %v74_v20 = vpop.permute.xlu1 %73  ;;  %v65_v21 = vpop.permute.xlu0 %64 }
  0x89   :  { %v76_v22 = vsel %vm75_vm2, %v72_v10, %v74_v20  ;;  %v77_v23 = vsel %vm75_vm2, %v74_v20, %v72_v10  ;;  %v69_v24 = vsel %vm68_vm1, %v63_v11, %v65_v21  ;;  %v70_v25 = vsel %vm68_vm1, %v65_v21, %v63_v11 }
  0x8a   :  { %v97_v26 = vsel %vm95_vm3, %v76_v22, %v70_v25  ;;  %v98_v27 = vsel %vm96_vm4, %v77_v23, %v69_v24  ;;  %v105_v30 = vsel %vm103_vm5, %v70_v25, %v76_v22  ;;  %v106_v31 = vsel %vm104_vm6, %v69_v24, %v77_v23 }
  0x8b   :  { %v111_v28 = vadd.f32 %v97_v26, %v486_v0  ;;  %v112_v29 = vadd.f32 %v98_v27, %v493_v2  ;;  %v121_v47 = vmul.f32 %v97_v26, %v97_v26  ;;  %v125_v52 = vmul.f32 %v105_v30, %v105_v30 }
  0x8c   :  { %v122_v53 = vmul.f32 %v98_v27, %v98_v27  ;;  %v126_v57 = vmul.f32 %v106_v31, %v106_v31  ;;  %v163_v25 = vperm.slane %v502_v6, 2 }
  0x8d   :  { %v526_v32 = vadd.f32 %v111_v28, %v105_v30  ;;  %v528_v33 = vadd.f32 %v112_v29, %v106_v31  ;;  %v123_v51 = vadd.f32 %v121_v47, %v119_v50  ;;  %v646_v50 = vperm.slane %v172_v34, 3 }
  0x8e   :  { %v124_v56 = vadd.f32 %v122_v53, %v120_v54  ;;  %v614_v29 = vperm.slane %v163_v25, 2 }
  0x8f   :  { %156 = vrot.lane.b32.xlu1 %v526_v32, %s454_s2  ;;  %149 = vrot.lane.b32.xlu2 %v526_v32, %s455_s27  ;;  %v564_v55 = vadd.f32 %v125_v52, %v123_v51  ;;  %vm176_vm12 = vcmp.eq.s32.totalorder %v646_v50, 1 }
  0x90   :  { %151 = vrot.lane.b32.xlu0 %v528_v33, %s455_s27  ;;  %v87_v35 = vpop.permute.xlu1 %86  ;;  %v85_v36 = vpop.permute.xlu0 %84  ;;  %v572_v59 = vadd.f32 %v126_v57, %v124_v56  ;;  %vm167_vm9 = vcmp.eq.s32.totalorder %v614_v29, 1 }
  0x91   :  { %v88_v39 = vsel %vm75_vm2, %v85_v36, %v87_v35  ;;  %v89_v40 = vsel %vm75_vm2, %v87_v35, %v85_v36 }
  0x92   :  { %v107_v41 = vsel %vm95_vm3, %v88_v39, %v83_v38  ;;  %v108_v42 = vsel %vm96_vm4, %v89_v40, %v82_v37  ;;  %v109_v45 = vsel %vm103_vm5, %v83_v38, %v88_v39  ;;  %v110_v46 = vsel %vm104_vm6, %v82_v37, %v89_v40 }
  0x93   :  { %v116_v43 = vadd.f32 %v108_v42, %v497_v3  ;;  %v115_v44 = vadd.f32 %v107_v41, %v490_v1  ;;  %v131_v58 = vmul.f32 %v107_v41, %v107_v41  ;;  %v132_v61 = vmul.f32 %v108_v42, %v108_v42 }
  0x94   :  { %v135_v5 = vmul.f32 %v109_v45, %v109_v45  ;;  %v136_v7 = vmul.f32 %v110_v46, %v110_v46  ;;  %v141_v10 = vmul.f32 %v107_v41, %v97_v26  ;;  %v142_v11 = vmul.f32 %v108_v42, %v98_v27 }
  0x95   :  { %v550_v48 = vadd.f32 %v116_v43, %v110_v46  ;;  %v552_v49 = vadd.f32 %v115_v44, %v109_v45  ;;  %v133_v63 = vadd.f32 %v131_v58, %v129_v60  ;;  %v134_v4 = vadd.f32 %v132_v61, %v130_v62 }
  0x96   :  { %v143_v15 = vadd.f32 %v141_v10, %v139_v9  ;;  %v144_v16 = vadd.f32 %v142_v11, %v140_v13  ;;  %v145_v17 = vmul.f32 %v109_v45, %v105_v30  ;;  %v146_v0 = vmul.f32 %v110_v46, %v106_v31 }
  0x97   :  { %158 = vrot.lane.b32.xlu2 %v528_v33, %s454_s2  ;;  %185 = vrot.lane.b32.xlu1 %v550_v48, %s455_s27  ;;  %v584_v8 = vadd.f32 %v135_v5, %v133_v63  ;;  %v588_v12 = vadd.f32 %v136_v7, %v134_v4  ;;  %v164_v26 = vperm.slane %v502_v6, 6  ;;  %v171_v31 = vperm.slane %v502_v6, 3 }
  0x98   :  { %183 = vrot.lane.b32.xlu0 %v552_v49, %s455_s27  ;;  %v598_v1 = vadd.f32 %v145_v17, %v143_v15  ;;  %v600_v18 = vadd.f32 %v146_v0, %v144_v16 }
  0x99   :  { %v616_v30 = vperm.slane %v164_v26, 2  ;;  %v644_v47 = vperm.slane %v171_v31, 3 }
  0x9b   :  { %vm168_vm10 = vcmp.eq.s32.totalorder %v616_v30, 1  ;;  %vm175_vm11 = vcmp.eq.s32.totalorder %v644_v47, 1 }
  0x9f   :  { %189 = vrot.lane.b32.xlu2 %v552_v49, %s454_s2  ;;  %203 = vrot.lane.b32.xlu1 %v564_v55, %s455_s27 }
  0xa0   :  { %191 = vrot.lane.b32.xlu0 %v550_v48, %s454_s2 }
  0xa7   :  { %205 = vrot.lane.b32.xlu2 %v572_v59, %s455_s27  ;;  %211 = vrot.lane.b32.xlu1 %v572_v59, %s454_s2 }
  0xa8   :  { %209 = vrot.lane.b32.xlu0 %v564_v55, %s454_s2 }
  0xaf   :  { %223 = vrot.lane.b32.xlu2 %v584_v8, %s455_s27  ;;  %229 = vrot.lane.b32.xlu1 %v584_v8, %s454_s2 }
  0xb0   :  { %225 = vrot.lane.b32.xlu0 %v588_v12, %s455_s27 }
  0xb7   :  { %231 = vrot.lane.b32.xlu2 %v588_v12, %s454_s2  ;;  %245 = vrot.lane.b32.xlu1 %v600_v18, %s455_s27 }
  0xb8   :  { %243 = vrot.lane.b32.xlu0 %v598_v1, %s455_s27 }
  0xbf   :  { %249 = vrot.lane.b32.xlu2 %v598_v1, %s454_s2 }
  0xc0   :  { %251 = vrot.lane.b32.xlu0 %v600_v18, %s454_s2 }
  0xe9   :  { %v150_v2 = vpop.permute.xlu2 %149 }
  0xf1   :  { %v159_v3 = vpop.permute.xlu2 %158 }
  0xf9   :  { %v190_v21 = vpop.permute.xlu2 %189 }
 0x101   :  { %v157_v19 = vpop.permute.xlu1 %156  ;;  %v206_v24 = vpop.permute.xlu2 %205 }
 0x102   :  { %v152_v20 = vpop.permute.xlu0 %151  ;;  %v161_v38 = vsel %vm160_vm8, %v157_v19, %v159_v3  ;;  %v162_v39 = vsel %vm160_vm8, %v159_v3, %v157_v19 }
 0x103   :  { %v154_v41 = vsel %vm153_vm7, %v150_v2, %v152_v20  ;;  %v155_v42 = vsel %vm153_vm7, %v152_v20, %v150_v2 }
 0x104   :  { %v169_v53 = vsel %vm167_vm9, %v161_v38, %v155_v42  ;;  %v170_v54 = vsel %vm168_vm10, %v162_v39, %v154_v41  ;;  %v177_v10 = vsel %vm175_vm11, %v155_v42, %v161_v38  ;;  %v178_v11 = vsel %vm176_vm12, %v154_v41, %v162_v39 }
 0x109   :  { %v186_v22 = vpop.permute.xlu1 %185  ;;  %v224_v35 = vpop.permute.xlu2 %223 }
 0x10a   :  { %v184_v23 = vpop.permute.xlu0 %183 }
 0x10b   :  { %v187_v6 = vsel %vm153_vm7, %v184_v23, %v186_v22  ;;  %v188_v40 = vsel %vm153_vm7, %v186_v22, %v184_v23 }
 0x111   :  { %v204_v28 = vpop.permute.xlu1 %203  ;;  %v232_v5 = vpop.permute.xlu2 %231 }
 0x112   :  { %v192_v27 = vpop.permute.xlu0 %191  ;;  %v207_v58 = vsel %vm153_vm7, %v204_v28, %v206_v24  ;;  %v208_v60 = vsel %vm153_vm7, %v206_v24, %v204_v28 }
 0x113   :  { %v193_v36 = vsel %vm160_vm8, %v190_v21, %v192_v27  ;;  %v194_v37 = vsel %vm160_vm8, %v192_v27, %v190_v21 }
 0x114   :  { %v195_v43 = vsel %vm167_vm9, %v193_v36, %v188_v40  ;;  %v196_v44 = vsel %vm168_vm10, %v194_v37, %v187_v6  ;;  %v197_v63 = vsel %vm175_vm11, %v188_v40, %v193_v36  ;;  %v198_v4 = vsel %vm176_vm12, %v187_v6, %v194_v37 }
 0x115   :  { %v199_v56 = vadd.f32 %v195_v43, %v552_v49  ;;  %v200_v57 = vadd.f32 %v196_v44, %v550_v48  ;;  %v179_v49 = vadd.f32 %v169_v53, %v526_v32  ;;  %v180_v48 = vadd.f32 %v170_v54, %v528_v33 }
 0x117   :  { %v201_v7 = vadd.f32 %v199_v56, %v197_v63  ;;  %v202_v9 = vadd.f32 %v200_v57, %v198_v4  ;;  %v181_v3 = vadd.f32 %v179_v49, %v177_v10  ;;  %v182_v19 = vadd.f32 %v180_v48, %v178_v11 }
 0x119   :  { %v212_v46 = vpop.permute.xlu1 %211  ;;  %v265_v20 = vmul.f32 %v201_v7, %v201_v7  ;;  %v266_v21 = vmul.f32 %v202_v9, %v202_v9  ;;  %v263_v36 = vmul.f32 %v181_v3, %v181_v3  ;;  %v269_v56 = vmul.f32 %v201_v7, %v181_v3  ;;  %v250_v57 = vpop.permute.xlu2 %249 }
 0x11a   :  { %v210_v45 = vpop.permute.xlu0 %209  ;;  %v270_v48 = vmul.f32 %v202_v9, %v182_v19 }
 0x11b   :  { %v213_v51 = vsel %vm160_vm8, %v210_v45, %v212_v46  ;;  %v214_v52 = vsel %vm160_vm8, %v212_v46, %v210_v45  ;;  %v267_v38 = vadd.f32 %v265_v20, %v263_v36  ;;  %v271_v9 = vmul.f32 2.0, %v269_v56 }
 0x11c   :  { %v215_v61 = vsel %vm167_vm9, %v213_v51, %v208_v60  ;;  %v216_v62 = vsel %vm168_vm10, %v214_v52, %v207_v58  ;;  %v217_v24 = vsel %vm175_vm11, %v208_v60, %v213_v51  ;;  %v218_v25 = vsel %vm176_vm12, %v207_v58, %v214_v52 }
 0x11d   :  { %v219_v13 = vadd.f32 %v215_v61, %v564_v55  ;;  %v220_v32 = vadd.f32 %v216_v62, %v572_v59  ;;  %v283_v44 = vadd.f32 0.0081, %v267_v38 }
 0x11f   :  { %v221_v28 = vadd.f32 %v219_v13, %v217_v24  ;;  %v222_v31 = vadd.f32 %v220_v32, %v218_v25  ;;  %v272_v32 = vmul.f32 2.0, %v270_v48 }
 0x121   :  { %v230_v15 = vpop.permute.xlu1 %229 }
 0x122   :  { %v226_v33 = vpop.permute.xlu0 %225  ;;  %v233_v0 = vsel %vm160_vm8, %v230_v15, %v232_v5  ;;  %v234_v2 = vsel %vm160_vm8, %v232_v5, %v230_v15 }
 0x123   :  { %v227_v16 = vsel %vm153_vm7, %v224_v35, %v226_v33  ;;  %v228_v17 = vsel %vm153_vm7, %v226_v33, %v224_v35 }
 0x124   :  { %v235_v55 = vsel %vm167_vm9, %v233_v0, %v228_v17  ;;  %v236_v59 = vsel %vm168_vm10, %v234_v2, %v227_v16  ;;  %v237_v26 = vsel %vm175_vm11, %v228_v17, %v233_v0  ;;  %v238_v27 = vsel %vm176_vm12, %v227_v16, %v234_v2 }
 0x125   :  { %v239_v22 = vadd.f32 %v235_v55, %v584_v8  ;;  %v240_v23 = vadd.f32 %v236_v59, %v588_v12  ;;  %v264_v8 = vmul.f32 %v182_v19, %v182_v19  ;;  %v273_v2 = vadd.f32 0.0081, %v271_v9 }
 0x127   :  { %v241_v34 = vadd.f32 %v239_v22, %v237_v26  ;;  %v242_v35 = vadd.f32 %v240_v23, %v238_v27  ;;  %v268_v6 = vadd.f32 %v266_v21, %v264_v8 }
 0x129   :  { %v285_v37 = vadd.f32 %v241_v34, %v221_v28  ;;  %v286_v12 = vadd.f32 %v242_v35, %v222_v31  ;;  %v284_v45 = vadd.f32 0.0081, %v268_v6  ;;  %v246_v52 = vpop.permute.xlu1 %245 }
 0x12a   :  { %v244_v39 = vpop.permute.xlu0 %243 }
 0x12b   :  { %v287_v40 = vmul.f32 9.0, %v285_v37  ;;  %v288_v41 = vmul.f32 9.0, %v286_v12  ;;  %v247_v58 = vsel %vm153_vm7, %v244_v39, %v246_v52  ;;  %v248_v61 = vsel %vm153_vm7, %v246_v52, %v244_v39 }
 0x12d   :  { %v289_v42 = vsub.f32 %v287_v40, %v267_v38  ;;  %v290_v43 = vsub.f32 %v288_v41, %v268_v6 }
 0x12f   :  { %v291_v46 = vadd.f32 0.0729, %v289_v42  ;;  %v292_v51 = vadd.f32 0.0729, %v290_v43 }
 0x131   :  { %v293_v53 = vmul.f32 %v291_v46, %v283_v44  ;;  %v294_v54 = vmul.f32 %v292_v51, %v284_v45 }
 0x132   :  { %v252_v60 = vpop.permute.xlu0 %251 }
 0x133   :  { %342 = vrcp.f32 %v293_v53  ;;  %v253_v62 = vsel %vm160_vm8, %v250_v57, %v252_v60  ;;  %v254_v49 = vsel %vm160_vm8, %v252_v60, %v250_v57 }
 0x134   :  { %344 = vrcp.f32 %v294_v54  ;;  %v255_v63 = vsel %vm167_vm9, %v253_v62, %v248_v61  ;;  %v256_v4 = vsel %vm168_vm10, %v254_v49, %v247_v58  ;;  %v257_v10 = vsel %vm175_vm11, %v248_v61, %v253_v62 }
 0x135   :  { %v259_v5 = vadd.f32 %v255_v63, %v598_v1  ;;  %v260_v7 = vadd.f32 %v256_v4, %v600_v18  ;;  %v258_v11 = vsel %vm176_vm12, %v247_v58, %v254_v49  ;;  %v274_v18 = vadd.f32 0.0081, %v272_v32 }
 0x137   :  { %v261_v14 = vadd.f32 %v259_v5, %v257_v10  ;;  %v262_v13 = vadd.f32 %v260_v7, %v258_v11 }
 0x139   :  { %v343_v33 = vpop.eup %342  ;;  %v275_v29 = vmul.f32 18.0, %v261_v14  ;;  %v276_v15 = vmul.f32 18.0, %v262_v13 }
 0x13a   :  { %v345_v16 = vpop.eup %344  ;;  %v297_v30 = vmul.f32 %v343_v33, %v293_v53 }
 0x13b   :  { %v298_v17 = vmul.f32 %v345_v16, %v294_v54  ;;  %v277_v0 = vsub.f32 %v275_v29, %v271_v9  ;;  %v278_v1 = vsub.f32 %v276_v15, %v272_v32 }
 0x13c   :  { %v299_v3 = vsub.f32 2.0, %v297_v30 }
 0x13d   :  { %v279_v47 = vadd.f32 0.0729, %v277_v0  ;;  %v280_v19 = vadd.f32 0.0729, %v278_v1  ;;  %v300_v55 = vsub.f32 2.0, %v298_v17 }
 0x13e   :  { %v301_v50 = vmul.f32 %v343_v33, %v299_v3 }
 0x13f   :  { %v281_v59 = vmul.f32 %v279_v47, %v273_v2  ;;  %v282_v20 = vmul.f32 %v280_v19, %v274_v18  ;;  %v302_v21 = vmul.f32 %v345_v16, %v300_v55 }
 0x141   :  { %v303_v22 = vmul.f32 %v301_v50, %v281_v59  ;;  %v304_v23 = vmul.f32 %v302_v21, %v282_v20 }
 0x143   :  { %v305_v24 = vsub.f32 1.0, %v303_v22  ;;  %v306_v25 = vsub.f32 1.0, %v304_v23 }
 0x145   :  { %v307_v26 = vmul.f32 0.5, %v305_v24  ;;  %v308_v27 = vmul.f32 0.5, %v306_v25 }
 0x147   :  { %v309_v28 = vmax.f32 %v307_v26, 0.0  ;;  %v310_v31 = vmax.f32 %v308_v27, 0.0 }
 0x149   :  { %v311_v34 = vmin.f32 %v309_v28, 1.0  ;;  %v312_v35 = vmin.f32 %v310_v31, 1.0 }
 0x14b   :  { %313 = vst [vmem:[#allocation8] sm:$0xff] %v311_v34 }
 0x14c   :  { %314 = vst [vmem:[#allocation8 + $0x8] sm:$0xff] %v312_v35 }
 0x14d   :  { %325 = dma.vmem_to_hbm [thread:$0]  %s321_s29, 256, %s323_s5, [#allocation4]  }
 0x14e   :  { %446 = dma.done.wait [#allocation4], 256  }
 0x14f   :  { %447 = vsyncadd [#allocation4], 4294967040 }
 0x150   :  { %330 = vsyncpa [#allocation3], 1 }
 0x151   :  { %331 = vsyncpa [#allocation6], 1 }
 0x152   :  { %332 = vsyncpa [#allocation4], 1 }

</bundles_post_ra>
